<compile_context>
chip_gen: v6e
topology: v6e:2x2x1
jax: 0.10.0
libtpu: 0.0.40
codegen_flags: <defaults>
</compile_context>

<pallas_src>
import functools

import jax
import jax.numpy as jnp
from jax.experimental import pallas as pl
from jax.experimental.pallas import tpu as pltpu

_C_SYMM = 37 * 2    # 74  -> (dist | omega)
_C_ASYM = 37 + 19   # 56  -> (theta | phi)
_C_OUT = _C_SYMM + _C_ASYM


def _distance_kernel(x_ij_ref, x_ji_ref, ws_ref, bs2_ref, wa_ref, ba_ref,
                     symm_ref, asymm_ref):
    """One (batch, i_tile, j_tile) grid point.

    x_ij_ref : (1, TL, TL, F)   x block at rows i_tile, cols j_tile
    x_ji_ref : (1, TL, TL, F)   x block at rows j_tile, cols i_tile (mirror)
    ws_ref   : (F, 74)          proj_symm weight, (in, out)
    bs2_ref  : (1, 74)          2 * proj_symm bias (symmetrization adds it twice)
    wa_ref   : (F, 56)          proj_asymm weight, (in, out)
    ba_ref   : (1, 56)          proj_asymm bias
    symm_ref : (1, TL, TL, 74)  symmetrized proj_symm logits
    asymm_ref: (1, TL, TL, 56)  proj_asymm logits
    """
    tl = x_ij_ref.shape[1]
    f = x_ij_ref.shape[3]

    x_ij = x_ij_ref[0]                                   # (TL, TL, F)
    # Symmetrize in the feature domain: for a linear map,
    # (xW + b) + (xW + b)^T == (x_ij + x_ji^T) W + 2b, so one MXU dot suffices.
    x_sym = x_ij + jnp.swapaxes(x_ji_ref[0], 0, 1)       # (TL, TL, F)

    # Leading-dim merges only (TL multiple of 8) -> layout-free reshapes.
    x_ij_2d = x_ij.reshape(tl * tl, f)
    x_sym_2d = x_sym.reshape(tl * tl, f)

    sym = jnp.dot(x_sym_2d, ws_ref[...],
                  preferred_element_type=jnp.float32) + bs2_ref[...]
    asym = jnp.dot(x_ij_2d, wa_ref[...],
                   preferred_element_type=jnp.float32) + ba_ref[...]

    # Leading-dim splits -> layout-free; unpadded (lane-masked) stores are the
    # HBM-optimal choice here since the kernel is memory-bound.
    symm_ref[0] = sym.reshape(tl, tl, _C_SYMM).astype(symm_ref.dtype)
    asymm_ref[0] = asym.reshape(tl, tl, _C_ASYM).astype(asymm_ref.dtype)


def _choose_config(l, b, f):
    """Pick (tile_l, padded L, vmem_limit_bytes) from a conservative VMEM model."""
    try:
        cap = int(pltpu.get_tpu_info().vmem_capacity_bytes)
    except Exception:  # pragma: no cover
        cap = 64 << 20
    cap = max(min(cap, 128 << 20), 16 << 20)
    # v7x may report per-chip capacity while each TensorCore only has 64 MiB,
    # and the compiler needs scratch headroom: never plan more than ~42 MiB
    # of kernel streams + temporaries.
    budget = min(int(cap * 0.42), 42 << 20)

    def est_bytes(t):
        # double-buffered input (2 streams) and output (2 streams) blocks
        io = 2 * 2 * t * t * f + 2 * t * t * _C_OUT
        # in-kernel temporaries: mirrored copy, x_sym, pre-store matmul results
        tmp = t * t * (2 * f + _C_OUT)
        # resident weights / biases
        w = f * _C_OUT + 4 * 128
        return 4 * (io + tmp + w)

    def cost(t):
        lp = -(-l // t) * t
        steps = (lp // t) ** 2
        # ~600 cycles per-step pipeline overhead + HBM-bound tile time (~1KB/cyc)
        return steps * (600.0 + t * t * (8.0 * f + 4.0 * _C_OUT) / 1000.0), lp

    cands = [t for t in range(8, 129, 8) if est_bytes(t) <= budget]
    if not cands:
        cands = [8]

    def pick(ts):
        return min(ts, key=lambda t: (cost(t)[0], -t))

    tile_l = pick(cands)
    _, l_pad = cost(tile_l)

    # v7x has 2 TensorCores: make sure the fully-"parallel" grid has >= 2 steps
    # when the whole problem would otherwise collapse to one (cheap everywhere).
    if b * (l_pad // tile_l) ** 2 < 2:
        split = [t for t in cands if t < l]
        if split:
            tile_l = pick(split)
            _, l_pad = cost(tile_l)

    vmem_limit = int(min(max(2 * est_bytes(tile_l), 32 << 20),
                         56 << 20, cap * 0.85))
    return tile_l, l_pad, vmem_limit


@functools.partial(jax.jit, static_argnames=("tile_l", "l_pad", "vmem_limit"))
def _forward_jit(x, w_symm, b_symm, w_asymm, b_asymm, *, tile_l, l_pad, vmem_limit):
    b, l, _, f = x.shape

    # nn.Linear computes x @ W.T + b  ->  pass W transposed to (in, out).
    ws = jnp.asarray(w_symm, jnp.float32).T              # (F, 74)
    wa = jnp.asarray(w_asymm, jnp.float32).T             # (F, 56)
    # Symmetrized logits add the bias twice (sym + sym^T), so pre-double it.
    bs2 = (2.0 * jnp.asarray(b_symm, jnp.float32)).reshape(1, _C_SYMM)
    ba = jnp.asarray(b_asymm, jnp.float32).reshape(1, _C_ASYM)

    xp = x.astype(jnp.float32)
    if l_pad != l:   # pad awkward L up to a tile multiple; trimmed after the call
        xp = jnp.pad(xp, ((0, 0), (0, l_pad - l), (0, l_pad - l), (0, 0)))

    grid = (b, l_pad // tile_l, l_pad // tile_l)

    symm, asymm = pl.pallas_call(
        _distance_kernel,
        out_shape=(
            jax.ShapeDtypeStruct((b, l_pad, l_pad, _C_SYMM), jnp.float32),
            jax.ShapeDtypeStruct((b, l_pad, l_pad, _C_ASYM), jnp.float32),
        ),
        grid_spec=pltpu.PrefetchScalarGridSpec(
            num_scalar_prefetch=0,
            grid=grid,
            in_specs=[
                # x block at (i_tile, j_tile)
                pl.BlockSpec((1, tile_l, tile_l, f), lambda bb, i, j: (bb, i, j, 0)),
                # mirrored x block at (j_tile, i_tile) for the symmetrization
                pl.BlockSpec((1, tile_l, tile_l, f), lambda bb, i, j: (bb, j, i, 0)),
                # weights / biases: constant-index, resident across the grid
                pl.BlockSpec((f, _C_SYMM), lambda bb, i, j: (0, 0)),
                pl.BlockSpec((1, _C_SYMM), lambda bb, i, j: (0, 0)),
                pl.BlockSpec((f, _C_ASYM), lambda bb, i, j: (0, 0)),
                pl.BlockSpec((1, _C_ASYM), lambda bb, i, j: (0, 0)),
            ],
            out_specs=[
                pl.BlockSpec((1, tile_l, tile_l, _C_SYMM), lambda bb, i, j: (bb, i, j, 0)),
                pl.BlockSpec((1, tile_l, tile_l, _C_ASYM), lambda bb, i, j: (bb, i, j, 0)),
            ],
        ),
        compiler_params=pltpu.CompilerParams(
            dimension_semantics=("parallel", "parallel", "parallel"),
            vmem_limit_bytes=vmem_limit),
    )(xp, xp, ws, bs2, wa, ba)

    if l_pad != l:
        symm = symm[:, :l, :l, :]
        asymm = asymm[:, :l, :l, :]

    # Layout plumbing: channel split + NHWC -> NCHW (PyTorch .permute(0, 3, 1, 2)).
    # TODO(synk): fold this permute into the kernel once lane-splitting reshapes
    # ((C, TL*TL) -> (C, TL, TL)) have a guaranteed Mosaic lowering.
    logits_theta = jnp.transpose(asymm[..., :37], (0, 3, 1, 2))
    logits_phi = jnp.transpose(asymm[..., 37:], (0, 3, 1, 2))
    logits_dist = jnp.transpose(symm[..., :37], (0, 3, 1, 2))
    logits_omega = jnp.transpose(symm[..., 37:], (0, 3, 1, 2))
    return logits_dist, logits_omega, logits_theta, logits_phi


def distance_network_forward(x, w_symm, b_symm, w_asymm, b_asymm):
    """Pallas implementation of DistanceNetwork.forward.

    x       : (B, L, L, n_feat) float32
    w_symm  : (74, n_feat)   (PyTorch nn.Linear weight layout)
    b_symm  : (74,)
    w_asymm : (56, n_feat)
    b_asymm : (56,)
    Returns (logits_dist, logits_omega, logits_theta, logits_phi) with shapes
    (B,37,L,L), (B,37,L,L), (B,37,L,L), (B,19,L,L) — identical to PyTorch.
    """
    b, l, _, f = x.shape
    tile_l, l_pad, vmem_limit = _choose_config(l, b, f)
    return _forward_jit(x, w_symm, b_symm, w_asymm, b_asymm,
                        tile_l=tile_l, l_pad=l_pad, vmem_limit=vmem_limit)


def _reference_forward(x, w_symm, b_symm, w_asymm, b_asymm):
    """Pure-JAX reference mirroring the PyTorch code line by line."""
    logits_asymm = jnp.einsum("bijf,cf->bijc", x, w_asymm) + b_asymm
    logits_theta = jnp.transpose(logits_asymm[..., :37], (0, 3, 1, 2))
    logits_phi = jnp.transpose(logits_asymm[..., 37:], (0, 3, 1, 2))
    logits_symm = jnp.einsum("bijf,cf->bijc", x, w_symm) + b_symm
    logits_symm = logits_symm + jnp.transpose(logits_symm, (0, 2, 1, 3))
    logits_dist = jnp.transpose(logits_symm[..., :37], (0, 3, 1, 2))
    logits_omega = jnp.transpose(logits_symm[..., 37:], (0, 3, 1, 2))
    return logits_dist, logits_omega, logits_theta, logits_phi


if __name__ == "__main__":
    B, L, N_FEAT = 2, 16, 32

    key = jax.random.PRNGKey(0)
    kx, kws, kbs, kwa, kba = jax.random.split(key, 5)

    x = jax.random.normal(kx, (B, L, L, N_FEAT), dtype=jnp.float32)

    # NOTE: the PyTorch module's reset_parameter() zeros all params, which would
    # make the test trivially zero; deterministic small random params are used
    # instead so the matmul / symmetrization path is actually exercised.
    w_symm = 0.05 * jax.random.normal(kws, (_C_SYMM, N_FEAT), dtype=jnp.float32)
    b_symm = 0.05 * jax.random.normal(kbs, (_C_SYMM,), dtype=jnp.float32)
    w_asymm = 0.05 * jax.random.normal(kwa, (_C_ASYM, N_FEAT), dtype=jnp.float32)
    b_asymm = 0.05 * jax.random.normal(kba, (_C_ASYM,), dtype=jnp.float32)

    outs = distance_network_forward(x, w_symm, b_symm, w_asymm, b_asymm)
    outs = jax.block_until_ready(outs)

    refs = _reference_forward(x, w_symm, b_symm, w_asymm, b_asymm)

    names = ("dist", "omega", "theta", "phi")
    expected_shapes = ((B, 37, L, L), (B, 37, L, L), (B, 37, L, L), (B, 19, L, L))
    for name, out, ref, shp in zip(names, outs, refs, expected_shapes):
        assert out.shape == shp, (name, out.shape, shp)
        assert jnp.allclose(out, ref, atol=1e-4, rtol=1e-4), name

    print("KERNEL_OK")
</pallas_src>

<mosaic_0001>
module attributes {stable_mosaic.version = 11 : i64} {
  func.func @_distance_kernel(%arg0: i32, %arg1: i32, %arg2: i32, %arg3: memref<1x16x16x32xf32, #tpu.memory_space<vmem>>, %arg4: memref<1x16x16x32xf32, #tpu.memory_space<vmem>>, %arg5: memref<32x74xf32, #tpu.memory_space<vmem>>, %arg6: memref<1x74xf32, #tpu.memory_space<vmem>>, %arg7: memref<32x56xf32, #tpu.memory_space<vmem>>, %arg8: memref<1x56xf32, #tpu.memory_space<vmem>>, %arg9: memref<1x16x16x74xf32, #tpu.memory_space<vmem>>, %arg10: memref<1x16x16x56xf32, #tpu.memory_space<vmem>>) attributes {dimension_semantics = [#tpu.dimension_semantics<parallel>, #tpu.dimension_semantics<parallel>, #tpu.dimension_semantics<parallel>], iteration_bounds = array<i64: 2, 1, 1>, scalar_prefetch = 0 : i64, scratch_operands = 0 : i64, tpu.core_type = #tpu.core_type<tc>, window_params = [{transform_indices = @transform_0, window_bounds = array<i64: 1, 16, 16, 32>}, {transform_indices = @transform_1, window_bounds = array<i64: 1, 16, 16, 32>}, {pipeline_mode = #tpu.pipeline_mode<synchronous>, transform_indices = @transform_2, window_bounds = array<i64: 32, 74>}, {pipeline_mode = #tpu.pipeline_mode<synchronous>, transform_indices = @transform_3, window_bounds = array<i64: 1, 74>}, {pipeline_mode = #tpu.pipeline_mode<synchronous>, transform_indices = @transform_4, window_bounds = array<i64: 32, 56>}, {pipeline_mode = #tpu.pipeline_mode<synchronous>, transform_indices = @transform_5, window_bounds = array<i64: 1, 56>}, {transform_indices = @transform_6, window_bounds = array<i64: 1, 16, 16, 74>}, {transform_indices = @transform_7, window_bounds = array<i64: 1, 16, 16, 56>}]} {
    %c0 = arith.constant 0 : index
    %c0_0 = arith.constant 0 : index
    %c0_1 = arith.constant 0 : index
    %c0_2 = arith.constant 0 : index
    %0 = vector.load %arg3[%c0, %c0_0, %c0_1, %c0_2] : memref<1x16x16x32xf32, #tpu.memory_space<vmem>>, vector<1x16x16x32xf32>
    %1 = vector.shape_cast %0 : vector<1x16x16x32xf32> to vector<16x16x32xf32>
    %c0_3 = arith.constant 0 : index
    %c0_4 = arith.constant 0 : index
    %c0_5 = arith.constant 0 : index
    %c0_6 = arith.constant 0 : index
    %2 = vector.load %arg4[%c0_3, %c0_4, %c0_5, %c0_6] : memref<1x16x16x32xf32, #tpu.memory_space<vmem>>, vector<1x16x16x32xf32>
    %3 = vector.shape_cast %2 : vector<1x16x16x32xf32> to vector<16x16x32xf32>
    %4 = tpu.transpose %3, [1, 0, 2] : vector<16x16x32xf32> -> vector<16x16x32xf32>
    %5 = arith.addf %1, %4 : vector<16x16x32xf32>
    %6 = vector.shape_cast %1 : vector<16x16x32xf32> to vector<256x32xf32>
    %7 = vector.shape_cast %5 : vector<16x16x32xf32> to vector<256x32xf32>
    %c0_7 = arith.constant 0 : index
    %c0_8 = arith.constant 0 : index
    %8 = vector.load %arg5[%c0_7, %c0_8] : memref<32x74xf32, #tpu.memory_space<vmem>>, vector<32x74xf32>
    %cst = arith.constant dense<0.000000e+00> : vector<256x74xf32>
    %9 = tpu.matmul %7, %8, %cst {dimension_numbers = #tpu.dot_dimension_numbers<[1], [0], [0], [1], [0, 0, 1, 1], [], []>} : vector<256x32xf32>, vector<32x74xf32>, vector<256x74xf32> -> vector<256x74xf32>
    %c0_9 = arith.constant 0 : index
    %c0_10 = arith.constant 0 : index
    %10 = vector.load %arg6[%c0_9, %c0_10] : memref<1x74xf32, #tpu.memory_space<vmem>>, vector<1x74xf32>
    %11 = vector.broadcast %10 : vector<1x74xf32> to vector<256x74xf32>
    %12 = arith.addf %9, %11 : vector<256x74xf32>
    %c0_11 = arith.constant 0 : index
    %c0_12 = arith.constant 0 : index
    %13 = vector.load %arg7[%c0_11, %c0_12] : memref<32x56xf32, #tpu.memory_space<vmem>>, vector<32x56xf32>
    %cst_13 = arith.constant dense<0.000000e+00> : vector<256x56xf32>
    %14 = tpu.matmul %6, %13, %cst_13 {dimension_numbers = #tpu.dot_dimension_numbers<[1], [0], [0], [1], [0, 0, 1, 1], [], []>} : vector<256x32xf32>, vector<32x56xf32>, vector<256x56xf32> -> vector<256x56xf32>
    %c0_14 = arith.constant 0 : index
    %c0_15 = arith.constant 0 : index
    %15 = vector.load %arg8[%c0_14, %c0_15] : memref<1x56xf32, #tpu.memory_space<vmem>>, vector<1x56xf32>
    %16 = vector.broadcast %15 : vector<1x56xf32> to vector<256x56xf32>
    %17 = arith.addf %14, %16 : vector<256x56xf32>
    %18 = vector.shape_cast %12 : vector<256x74xf32> to vector<16x16x74xf32>
    %c0_16 = arith.constant 0 : index
    %c0_17 = arith.constant 0 : index
    %c0_18 = arith.constant 0 : index
    %c0_19 = arith.constant 0 : index
    %19 = vector.load %arg9[%c0_16, %c0_17, %c0_18, %c0_19] : memref<1x16x16x74xf32, #tpu.memory_space<vmem>>, vector<1x16x16x74xf32>
    %20 = vector.shape_cast %19 : vector<1x16x16x74xf32> to vector<16x16x74xf32>
    %21 = vector.shape_cast %18 : vector<16x16x74xf32> to vector<1x16x16x74xf32>
    tpu.vector_store %arg9[%c0_16, %c0_17, %c0_18, %c0_19], %21 {strides = array<i32>} : memref<1x16x16x74xf32, #tpu.memory_space<vmem>>, vector<1x16x16x74xf32>,
    %22 = vector.shape_cast %17 : vector<256x56xf32> to vector<16x16x56xf32>
    %c0_20 = arith.constant 0 : index
    %c0_21 = arith.constant 0 : index
    %c0_22 = arith.constant 0 : index
    %c0_23 = arith.constant 0 : index
    %23 = vector.load %arg10[%c0_20, %c0_21, %c0_22, %c0_23] : memref<1x16x16x56xf32, #tpu.memory_space<vmem>>, vector<1x16x16x56xf32>
    %24 = vector.shape_cast %23 : vector<1x16x16x56xf32> to vector<16x16x56xf32>
    %25 = vector.shape_cast %22 : vector<16x16x56xf32> to vector<1x16x16x56xf32>
    tpu.vector_store %arg10[%c0_20, %c0_21, %c0_22, %c0_23], %25 {strides = array<i32>} : memref<1x16x16x56xf32, #tpu.memory_space<vmem>>, vector<1x16x16x56xf32>,
    return
  }
  func.func @transform_0(%arg0: i32, %arg1: i32, %arg2: i32) -> (i32, i32, i32, i32) {
    %c0_i32 = arith.constant 0 : i32
    %c0_i32_0 = arith.constant 0 : i32
    return %arg0, %arg1, %arg2, %c0_i32 : i32, i32, i32, i32
  }
  func.func @transform_1(%arg0: i32, %arg1: i32, %arg2: i32) -> (i32, i32, i32, i32) {
    %c0_i32 = arith.constant 0 : i32
    %c0_i32_0 = arith.constant 0 : i32
    return %arg0, %arg2, %arg1, %c0_i32 : i32, i32, i32, i32
  }
  func.func @transform_2(%arg0: i32, %arg1: i32, %arg2: i32) -> (i32, i32) {
    %c0_i32 = arith.constant 0 : i32
    %c0_i32_0 = arith.constant 0 : i32
    %c0_i32_1 = arith.constant 0 : i32
    return %c0_i32, %c0_i32_0 : i32, i32
  }
  func.func @transform_3(%arg0: i32, %arg1: i32, %arg2: i32) -> (i32, i32) {
    %c0_i32 = arith.constant 0 : i32
    %c0_i32_0 = arith.constant 0 : i32
    %c0_i32_1 = arith.constant 0 : i32
    return %c0_i32, %c0_i32_0 : i32, i32
  }
  func.func @transform_4(%arg0: i32, %arg1: i32, %arg2: i32) -> (i32, i32) {
    %c0_i32 = arith.constant 0 : i32
    %c0_i32_0 = arith.constant 0 : i32
    %c0_i32_1 = arith.constant 0 : i32
    return %c0_i32, %c0_i32_0 : i32, i32
  }
  func.func @transform_5(%arg0: i32, %arg1: i32, %arg2: i32) -> (i32, i32) {
    %c0_i32 = arith.constant 0 : i32
    %c0_i32_0 = arith.constant 0 : i32
    %c0_i32_1 = arith.constant 0 : i32
    return %c0_i32, %c0_i32_0 : i32, i32
  }
  func.func @transform_6(%arg0: i32, %arg1: i32, %arg2: i32) -> (i32, i32, i32, i32) {
    %c0_i32 = arith.constant 0 : i32
    %c0_i32_0 = arith.constant 0 : i32
    return %arg0, %arg1, %arg2, %c0_i32 : i32, i32, i32, i32
  }
  func.func @transform_7(%arg0: i32, %arg1: i32, %arg2: i32) -> (i32, i32, i32, i32) {
    %c0_i32 = arith.constant 0 : i32
    %c0_i32_0 = arith.constant 0 : i32
    return %arg0, %arg1, %arg2, %c0_i32 : i32, i32, i32, i32
  }
}

</mosaic_0001>

<bundles_post_ra>
// kernel: _forward_jit.1
= control target key start
LH: loop header
LB: loop body
LE: loop exit
PB: predicated region body
PF: predicated region fallthrough
CT: control target
= control target key end

     0   :  { %s3476_s0 = inlined_call_operand.hbm [shape: f32[2,16,16,32], index: 0, kind: input, shape index: {}, may-alias: {0,1}]   ;;  %s3477_s1 = inlined_call_operand.hbm [shape: f32[2,16,16,32], index: 1, kind: input, shape index: {}, may-alias: {0,1}]   ;;  %s3478_s2 = inlined_call_operand.hbm [shape: f32[32,74], index: 2, kind: input, shape index: {}]   ;;  %s3479_s3 = inlined_call_operand.vmem [shape: f32[1,74], index: 3, kind: input, shape index: {}]   ;;  %s3480_s4 = inlined_call_operand.hbm [shape: f32[32,56], index: 4, kind: input, shape index: {}]   ;;  %s3481_s5 = inlined_call_operand.vmem [shape: f32[1,56], index: 5, kind: input, shape index: {}]   ;;  %s3482_s6 = inlined_call_operand.vmem [shape: f32[2,16,16,74], index: 6, kind: output, shape index: {0}]   ;;  %s3483_s7 = inlined_call_operand.vmem [shape: f32[2,16,16,56], index: 7, kind: output, shape index: {1}]  }
   0x1   :  { %3489 = sst [smem:[#allocation13_spill]] %s3476_s0 }
   0x2   :  { %3490 = sst [smem:[#allocation14_spill]] %s3478_s2 }
   0x3   :  { %3491 = sst [smem:[#allocation15_spill]] %s3480_s4 }
   0x4   :  { %13 = vsyncpa [#allocation3], 0 }
   0x5   :  { %15 = vsyncpa [#allocation3 + $0x1], 0 }
   0x6   :  { %16 = vsyncpa [#allocation5], 0 }
   0x7   :  { %18 = vsyncpa [#allocation5 + $0x1], 0 }
   0x8   :  { %19 = vsyncpa [#allocation8], 0  ;;  %s2658_s24 = smov 0   ;;  %s2660_s25 = smov 0  }
   0x9   :  { %s2662_s26 = smov 0   ;;  %s2664_s27 = smov 0  }
   0xa   :  { %s2666_s28 = smov 0   ;;  %s2668_s29 = smov 0  }
   0xb LB: > { %s3484_s30 = sadd.s32 4294967295, %s2608_s29   ;;  %p68_p0 = scmp.ne.s32.totalorder %s2592_s25, %s2588_s24  ;;  %s2608_s29 = sphi %s2668_s29, %s25_s29   ;;  %s2604_s28 = sphi %s2666_s28, %s3508_s28   ;;  %s2600_s27 = sphi %s2664_s27, %s3507_s27   ;;  %s2596_s26 = sphi %s2662_s26, %s3506_s26   ;;  %s2592_s25 = sphi %s2660_s25, %s3505_s25   ;;  %s2588_s24 = sphi %s2658_s24, %s3504_s24  }
   0xc   : > { %p2690_p1 = scmp.eq.s32.totalorder %s3484_s30, 0  ;;  %p2078_p2 = scmp.ge.s32.totalorder %s2608_s29, 1 }
   0xd   : > { %p253_p3 = scmp.lt.s32.totalorder %s2608_s29, 3  ;;  %s2610_s11 = smov [#allocation6]  }
   0xe   : > { %p2698_p4 = por %p2690_p1, %p68_p0  ;;  %s265_s12 = sshll.u32 %s2610_s11, 4  ;;  %s266_s12 = int_to_ptr.vmem [resolvable:$true] %s265_s12 }
   0xf   : > { %p2702_p5 = pnand %p2078_p2, %p253_p3  ;;  %s2611_s14 = smov [#allocation7]  }
  0x10   : > { %s281_s15 = sshll.u32 %s2611_s14, 4  ;;  %s2449_s16 = scalar_lea.vmem %s266_s12, 512  ;;  %s282_s15 = int_to_ptr.vmem [resolvable:$true] %s281_s15 }
  0x11   : > { %p2365_p6 = pneg %p2702_p5  ;;  %p2450_p9 = scmp.ne.s32.totalorder %s266_s12, %s2449_s16 }
  0x12   : > { %p2457_p12 = scmp.lt.s32.totalorder %s266_s12, %s266_s12  ;;  %p2458_p13 = scmp.lt.s32.totalorder %s2449_s16, %s2449_s16 }
  0x13   : > { %p2710_p7 = pnand %p2365_p6, %p2690_p1 }
  0x14   : > { %p2459_p0 = por %p2458_p13, %p2457_p12 }
  0x15   : > { %p2440_p8 = pneg %p2710_p7 }
  0x17   : > { %p2452_p10 = pnand %p2450_p9, %p2440_p8 }
  0x19   : > { %p2453_p11 = pneg %p2452_p10 }
  0x1b   : > { %p2460_p2 = pnand %p2459_p0, %p2453_p11 }
  0x1d   : > { %2463 = shalt.err (!%p2460_p2)
}
  0x1e   : > { %s3485_s17 = smov 128   ;;  %s3487_s18 = smov 8  }
  0x1f   : > { %s3496_s2 = sld [smem:[#allocation14_spill]]  ;;  %s2475_s21 = scalar_lea.vmem %s282_s15, 512 }
  0x20   : > { %p2476_p3 = scmp.ne.s32.totalorder %s282_s15, %s2475_s21  ;;  %p2483_p10 = scmp.lt.s32.totalorder %s282_s15, %s282_s15 }
  0x21   : > { %p2484_p11 = scmp.lt.s32.totalorder %s2475_s21, %s2475_s21 }
  0x22   : > { %p2478_p6 = pnand %p2476_p3, %p2440_p8 }
  0x23   : > { %p2485_p12 = por %p2484_p11, %p2483_p10 }
  0x24   : > { %p2479_p9 = pneg %p2478_p6 }
  0x25   : > { %2368 = dma.hbm_to_vmem [thread:$0]  (!%p2710_p7), %s3496_s2, 512, %s266_s12, [#allocation5], %s3485_s17, %s3485_s17, %s3487_s18  }
  0x26   : > { %p2486_p13 = pnand %p2485_p12, %p2479_p9 }
  0x28   : > { %2489 = shalt.err (!%p2486_p13)
}
  0x29   : > { %s3497_s4 = sld [smem:[#allocation15_spill]]  ;;  %s44_s24 = sadd.s32 1, %s2604_s28 }
  0x2a   : > { %s55_s11 = sadd.s32 1, %s2596_s26  ;;  %p46_p8 = scmp.ge.s32.totalorder %s44_s24, 2 }
  0x2b   : > { %p62_p0 = scmp.ne.s32.totalorder %s2596_s26, %s2592_s25  ;;  %p63_p2 = scmp.eq.s32.totalorder %s2608_s29, 0 }
  0x2c   : > { %p2381_p3 = scmp.lt.s32.totalorder %s2608_s29, 2  ;;  %s3510_s24 = smov (%p46_p8, %s44_s24), 0 }
  0x2d   : > { %p64_p6 = por %p63_p2, %p62_p0  ;;  %s298_s12 = sand.u32 1, %s2596_s26  }
  0x2e   : > { %s48_s13 = ssub.s32 %s2604_s28, %s3510_s24  ;;  %s2082_s14 = sshll.u32 %s298_s12, 8 }
  0x2f   : > { %2371 = dma.hbm_to_vmem [thread:$0]  (!%p2710_p7), %s3497_s4, 512, %s282_s15, [#allocation8], %s3485_s17, %s3485_s17, %s3487_s18  }
  0x30   : > { %p53_p9 = scmp.eq.s32.totalorder %s48_s13, 0  ;;  %s2165_s16 = sshll.u32 %s2604_s28, 12 }
  0x31   : > { %s3498_s0 = sld [smem:[#allocation13_spill]]  ;;  %s302_s22 = scalar_lea.vmem [#allocation2], %s2082_s14 }
  0x32   : > { %s2751_s19 = scalar_select %p53_p9, %s2596_s26, %s55_s11  }
  0x33   : > { %s314_s23 = sshll.u32 %s302_s22, 4  ;;  %p2758_p7 = pnand %p2381_p3, %p64_p6  ;;  %s315_s23 = int_to_ptr.vmem [resolvable:$true] %s314_s23 }
  0x34   : > { %s2765_s13 = scalar_lea.hbm %s3477_s1, %s2165_s16  ;;  %s328_s11 = scalar_lea.vmem [#allocation4], %s2082_s14 }
  0x35   : > { %s340_s2 = sshll.u32 %s328_s11, 4  ;;  %s299_s4 = scalar_lea.sflag [#allocation3], %s298_s12  ;;  %s341_s2 = int_to_ptr.vmem [resolvable:$true] %s340_s2 }
  0x36   : > { %p2492_p10 = pneg %p2758_p7  ;;  %s2503_s20 = scalar_lea.vmem %s315_s23, 4096 }
  0x37   : > { %s313_s21 = scalar_lea.hbm %s3498_s0, %s2165_s16  ;;  %p2504_p11 = scmp.ne.s32.totalorder %s315_s23, %s2503_s20 }
  0x38   : > { %s2614_s15 = smov [#allocation2]  }
  0x39   : > { %p2506_p12 = pnand %p2504_p11, %p2492_p10  ;;  %s2508_s22 = sshll.u32 %s2614_s15, 4  ;;  %s2509_s22 = int_to_ptr.vmem [resolvable:$false] %s2508_s22 }
  0x3a   : > { %s2510_s0 = scalar_lea.vmem %s2509_s22, 8192  ;;  %p2511_p8 = scmp.lt.s32.totalorder %s315_s23, %s2509_s22 }
  0x3b   : > { %p2507_p13 = pneg %p2506_p12  ;;  %p2512_p0 = scmp.lt.s32.totalorder %s2510_s0, %s2503_s20 }
  0x3d   : > { %p2513_p2 = por %p2512_p0, %p2511_p8 }
  0x3f   : > { %p2514_p3 = pnand %p2513_p2, %p2507_p13 }
  0x41   : > { %2517 = shalt.err (!%p2514_p3)
}
  0x42   : > { %s3500_s17 = smov 8   ;;  %s3501_s18 = smov 128  }
  0x43   : > { %2375 = dma.hbm_to_vmem [thread:$0]  (!%p2758_p7), %s313_s21, 4096, %s315_s23, %s299_s4, %s3501_s18, %s3501_s18, %s3500_s17  }
  0x44   : > { %s324_s12 = sand.u32 1, %s2608_s29   ;;  %s2531_s16 = scalar_lea.vmem %s341_s2, 4096 }
  0x45   : > { %s325_s14 = scalar_lea.sflag [#allocation5], %s324_s12  ;;  %p2532_p6 = scmp.ne.s32.totalorder %s341_s2, %s2531_s16 }
  0x46   : > { %s2615_s0 = smov [#allocation4]  }
  0x47   : > { %p2534_p9 = pnand %p2532_p6, %p2492_p10  ;;  %s2536_s11 = sshll.u32 %s2615_s0, 4  ;;  %s2537_s11 = int_to_ptr.vmem [resolvable:$false] %s2536_s11 }
  0x48   : > { %s2538_s20 = scalar_lea.vmem %s2537_s11, 8192  ;;  %p2539_p12 = scmp.lt.s32.totalorder %s341_s2, %s2537_s11 }
  0x49   : > { %p2535_p11 = pneg %p2534_p9  ;;  %p2540_p13 = scmp.lt.s32.totalorder %s2538_s20, %s2531_s16 }
  0x4b   : > { %p2541_p8 = por %p2540_p13, %p2539_p12 }
  0x4d   : > { %p2542_p0 = pnand %p2541_p8, %p2535_p11 }
  0x4f   : > { %2545 = shalt.err (!%p2542_p0)
}
  0x50   : > { %2378 = dma.hbm_to_vmem [thread:$0]  (!%p2758_p7), %s2765_s13, 4096, %s341_s2, %s325_s14, %s3501_s18, %s3501_s18, %s3500_s17  }
  0x51   : > { %352 = sbr.rel (%p2702_p5) target bundleno = 379 (0x17b), region = 44  ;;  %s354_s4 = sand.u32 (!%p2702_p5), 1, %s2592_s25  }
  0x52   : > { %s2089_s21 = sshll.u32 (!%p2702_p5), %s354_s4, 8  ;;  %s355_s23 = scalar_lea.sflag (!%p2702_p5), [#allocation3], %s354_s4 }
  0x53   : > { %s2790_s15 = scalar_lea.vmem (!%p2702_p5), [#allocation2], %s2089_s21 }
  0x56   : > { %2571 = dma.done.wait (%p2698_p4), %s355_s23, 4096  }
  0x57   : > { %2573 = vsyncadd (%p2698_p4), %s355_s23, 4294963200  ;;  %s3502_s30 = sadd.s32 4294967295, %s2608_s29   ;;  %s2798_s13 = scalar_lea.vmem [#allocation4], %s2089_s21 }
  0x58   : > { %s363_s22 = sand.u32 1, %s3502_s30  }
  0x59   : > { %s364_s2 = scalar_lea.sflag [#allocation5], %s363_s22 }
  0x5a   : > { %2575 = dma.done.wait (%p2698_p4), %s364_s2, 4096  }
  0x5b   : > { %2577 = vsyncadd (%p2698_p4), %s364_s2, 4294963200 }
  0x5c   : > { %2579 = dma.done.wait (%p2690_p1), [#allocation5], 512  }
  0x5d   : > { %2581 = vsyncadd (%p2690_p1), [#allocation5], 4294966784 }
  0x5e   : > { %2583 = dma.done.wait (%p2690_p1), [#allocation8], 512  }
  0x5f   : > { %2585 = vsyncadd (%p2690_p1), [#allocation8], 4294966784  ;;  %v2616_v0 = vmov 1983009808   ;;  %v539_v2 = vlaneseq  ;;  %v1446_v5 = vld [vmem:[#allocation7 + $0x18] sm:$0xff]  ;;  %v1445_v7 = vld [vmem:[#allocation7 + $0x10] sm:$0xff] }
  0x60   : > { %v537_v1 = vunpack.c.l.s4 %v2616_v0  ;;  %v1113_v6 = vld [vmem:[#allocation6 + $0x18] sm:$0xff]  ;;  %v2617_v8 = vmov 1934713408   ;;  %2297 = vmatprep.subr.mxu1 %v1446_v5  ;;  %v1112_v10 = vld [vmem:[#allocation6 + $0x10] sm:$0xff]  ;;  %v1444_v11 = vld [vmem:[#allocation7 + $0x8] sm:$0xff]  ;;  %vm1121_vm0 = vcmask 261120  }
  0x61   : > { %v540_v4 = vshrl.u32 %v539_v2, 7  ;;  %v601_v9 = vunpack.c.l.s4 %v2617_v8  ;;  %2241 = vmatprep.subr.mxu0 %v1113_v6  ;;  %2298 = vmatpush3.msra.mxu1 %v1446_v5  ;;  %v1111_v12 = vld [vmem:[#allocation6 + $0x8] sm:$0xff]  ;;  %v1443_v13 = vld [vmem:[#allocation7] sm:$0xff]  ;;  %v2819_v17 = vld [vmem:[%s2798_s13 + $0x90] sm:$0xff]  ;;  %p440_p1 = scmp.lt.s32.totalorder %s2600_s27, 1  ;;  %vm1808_vm1 = vcmask 457728  }
  0x62   : > { %v538_v3 = vunpack.c.0.s8 %v537_v1  ;;  %2242 = vmatpush3.msra.mxu0 %v1113_v6  ;;  %v2813_v14 = vld [vmem:[%s2790_s15] sm:$0xff]  ;;  %2299 = vmatprep.subr.mxu1 %v1445_v7  ;;  %v2824_v19 = vld [vmem:[%s2790_s15 + $0x8] sm:$0xff]  ;;  %v2830_v21 = vld [vmem:[%s2798_s13 + $0xb0] sm:$0xff]  ;;  %vm1775_vm2 = vcmask 605184  }
  0x63   : > { %2243 = vmatprep.subr.mxu0 %v1112_v10  ;;  %v1110_v15 = vld [vmem:[#allocation6] sm:$0xff]  ;;  %2300 = vmatpush3.msra.mxu1 %v1445_v7  ;;  %v602_v23 = vunpack.c.0.s8 %v601_v9  ;;  %v2836_v24 = vld [vmem:[%s2798_s13 + $0xd0] sm:$0xff]  ;;  %v686_v28 = vcombine.low %v2819_v17, %v2830_v21  ;;  %v2874_v51 = vld [vmem:[%s2790_s15 + $0x18] sm:$0xff]  ;;  %s3512_s27 = smov (!%p440_p1, %s2600_s27), 1 }
  0x64   : > { %v2816_v16 = vld [vmem:[%s2798_s13 + $0x80] sm:$0xff]  ;;  %v2821_v18 = vsub.s32 %v538_v3, %v540_v4  ;;  %2244 = vmatpush3.msra.mxu0 %v1112_v10  ;;  %2301 = vmatprep.subr.mxu1 %v1444_v11  ;;  %v2842_v26 = vld [vmem:[%s2798_s13 + $0xf0] sm:$0xff]  ;;  %v2889_v1 = vld [vmem:[%s2790_s15 + $0x28] sm:$0xff]  ;;  %s2167_s8 = sshll.u32 %s3512_s27, 8 }
  0x65   : > { %v2827_v20 = vld [vmem:[%s2798_s13 + $0xa0] sm:$0xff]  ;;  %2245 = vmatprep.subr.mxu0 %v1111_v12  ;;  %2302 = vmatpush3.msra.mxu1 %v1444_v11  ;;  %v718_v30 = vcombine.low %v2836_v24, %v2842_v26  ;;  %v504_v32 = vld [vmem:[%s2798_s13 + $0x10] sm:$0xff]  ;;  %v2862_v40 = vsub.s32 %v602_v23, %v540_v4  ;;  %s3254_s12 = scalar_lea.vmem %s3483_s7, %s2167_s8  ;;  %s3283_s11 = scalar_lea.vmem %s3482_s6, %s2167_s8 }
  0x66   : > { %v2833_v22 = vld [vmem:[%s2798_s13 + $0xc0] sm:$0xff]  ;;  %v670_v27 = vcombine.low %v2816_v16, %v2827_v20  ;;  %2246 = vmatpush3.msra.mxu0 %v1111_v12  ;;  %2303 = vmatprep.subr.mxu1 %v1443_v13  ;;  %v694_v35 = vrot.slane %v686_v28, %v2821_v18  ;;  %v508_v36 = vld [vmem:[%s2798_s13 + $0x30] sm:$0xff]  ;;  %v671_v3 = vcombine.high %v2816_v16, %v2827_v20 }
  0x67   : > { %v2839_v25 = vld [vmem:[%s2798_s13 + $0xe0] sm:$0xff]  ;;  %2305 = vmatprep.mubr.msk.f32.mxu1 %vm1121_vm0, %v2813_v14  ;;  %v512_v38 = vld [vmem:[%s2798_s13 + $0x50] sm:$0xff]  ;;  %2304 = vmatpush3.msra.mxu1 %v1443_v13  ;;  %v726_v42 = vrot.slane %v718_v30, %v2821_v18  ;;  %v550_v48 = vcombine.low %v504_v32, %v508_v36  ;;  %v551_v58 = vcombine.high %v504_v32, %v508_v36 }
  0x68   : > { %v702_v29 = vcombine.low %v2833_v22, %v2839_v25  ;;  %v502_v31 = vld [vmem:[%s2798_s13] sm:$0xff]  ;;  %v678_v34 = vrot.slane %v670_v27, %v2821_v18  ;;  %2247 = vmatprep.subr.mxu0 %v1110_v15  ;;  %v516_v44 = vld [vmem:[%s2798_s13 + $0x70] sm:$0xff]  ;;  %2306 = vmatmul.mubr.msk.f32.vlgmr.msra.gmra.mxu1 %vm1121_vm0, %v2824_v19  ;;  %v687_v12 = vcombine.high %v2819_v17, %v2830_v21  ;;  %v2916_v17 = vld [vmem:[%s2790_s15 + $0x38] sm:$0xff] }
  0x69   : > { %v506_v33 = vld [vmem:[%s2798_s13 + $0x20] sm:$0xff]  ;;  %v472_v45 = vld [vmem:[%s2790_s15 + $0x10] sm:$0xff]  ;;  %2248 = vmatpush3.msra.mxu0 %v1110_v15  ;;  %v558_v53 = vrot.slane %v550_v48, %v2821_v18  ;;  %v582_v54 = vcombine.low %v512_v38, %v516_v44  ;;  %v583_v0 = vcombine.high %v512_v38, %v516_v44  ;;  %v2906_v16 = vrot.slane %v551_v58, %v2821_v18  ;;  %v2976_v48 = vld [vmem:[%s2798_s13 + $0x38] sm:$0xff] }
  0x6a   : > { %v510_v37 = vld [vmem:[%s2798_s13 + $0x40] sm:$0xff]  ;;  %v534_v39 = vcombine.low %v502_v31, %v506_v33  ;;  %v710_v41 = vrot.slane %v702_v29, %v2821_v18  ;;  %v734_v46 = vcombine.low %v678_v34, %v694_v35  ;;  %2308 = vmatprep.mubr.msk.f32.mxu1 %vm1121_vm0, %v472_v45  ;;  %v535_v52 = vcombine.high %v502_v31, %v506_v33  ;;  %v476_v8 = vld [vmem:[%s2790_s15 + $0x30] sm:$0xff] }
  0x6b   : > { %v514_v43 = vld [vmem:[%s2798_s13 + $0x60] sm:$0xff]  ;;  %v590_v61 = vrot.slane %v582_v54, %v2821_v18  ;;  %v735_v2 = vcombine.high %v678_v34, %v694_v35  ;;  %v2919_v21 = vrot.slane %v583_v0, %v2821_v18  ;;  %v2928_v32 = vrot.slane %v671_v3, %v2821_v18  ;;  %v2959_v44 = vld [vmem:[%s2790_s15 + $0x50] sm:$0xff]  ;;  %v2995_v54 = vld [vmem:[%s2798_s13 + $0x68] sm:$0xff] }
  0x6c   : > { %v542_v47 = vrot.slane %v534_v39, %v2821_v18  ;;  %v766_v49 = vcombine.low %v710_v41, %v726_v42  ;;  %v566_v50 = vcombine.low %v510_v37, %v514_v43  ;;  %v2878_v55 = vld [vmem:[%s2790_s15 + $0x20] sm:$0xff]  ;;  %v742_v56 = vrot.slane %v734_v46, %v2862_v40  ;;  %2309 = vmatmul.mubr.msk.f32.gmra.mxu1 %vm1121_vm0, %v2874_v51  ;;  %v2965_v46 = vld [vmem:[%s2798_s13 + $0x28] sm:$0xff] }
  0x6d   : > { %v567_v60 = vcombine.high %v510_v37, %v514_v43  ;;  %2311 = vmatprep.mubr.msk.f32.mxu1 %vm1121_vm0, %v2878_v55  ;;  %v767_v7 = vcombine.high %v710_v41, %v726_v42  ;;  %v2897_v11 = vrot.slane %v535_v52, %v2821_v18  ;;  %v2912_v27 = vrot.slane %v735_v2, %v2862_v40  ;;  %v2925_v31 = vld [vmem:[%s2790_s15 + $0x40] sm:$0xff] }
  0x6e   : > { %v774_v57 = vrot.slane %v766_v49, %v2862_v40  ;;  %v574_v59 = vrot.slane %v566_v50, %v2821_v18  ;;  %v598_v62 = vcombine.low %v542_v47, %v558_v53  ;;  %v599_v63 = vcombine.high %v542_v47, %v558_v53  ;;  %v2973_v47 = vld [vmem:[%s2798_s13 + $0x18] sm:$0xff]  ;;  %v2979_v49 = vld [vmem:[%s2798_s13 + $0x48] sm:$0xff] }
  0x6f   : > { %v2909_v20 = vrot.slane %v567_v60, %v2821_v18  ;;  %v2922_v30 = vrot.slane %v767_v7, %v2862_v40  ;;  %v2932_v35 = vrot.slane %v687_v12, %v2821_v18  ;;  %v703_v36 = vcombine.high %v2833_v22, %v2839_v25  ;;  %v2946_v22 = vld [vmem:[%s2790_s15 + $0x48] sm:$0xff] }
  0x70   : > { %v606_v4 = vrot.slane %v598_v62, %v2862_v40  ;;  %v630_v5 = vcombine.low %v574_v59, %v590_v61  ;;  %v631_v6 = vcombine.high %v574_v59, %v590_v61  ;;  %v798_v9 = vcombine.low %v742_v56, %v774_v57  ;;  %2312 = vmatmul.mubr.msk.f32.gmra.mxu1 %vm1121_vm0, %v2889_v1  ;;  %v3052_v12 = vld [vmem:[%s2790_s15 + $0x68] sm:$0xff] }
  0x71   : > { %v613_v10 = vrot.slane %v599_v63, %v2862_v40  ;;  %v799_v23 = vcombine.high %v742_v56, %v774_v57  ;;  %2314 = vmatprep.mubr.msk.f32.mxu1 %vm1121_vm0, %v476_v8  ;;  %v614_v39 = vcombine.low %v2897_v11, %v2906_v16  ;;  %v719_v25 = vcombine.high %v2836_v24, %v2842_v26  ;;  %v2998_v56 = vld [vmem:[%s2798_s13 + $0x78] sm:$0xff]  ;;  %v3016_v63 = vld [vmem:[%s2790_s15 + $0x60] sm:$0xff] }
  0x72   : > { %v638_v13 = vrot.slane %v630_v5, %v2862_v40  ;;  %v645_v15 = vrot.slane %v631_v6, %v2862_v40  ;;  %v1079_v33 = vadd.f32 %v798_v9, %v2824_v19  ;;  %v646_v19 = vcombine.low %v2909_v20, %v2919_v21  ;;  %v3005_v57 = vld [vmem:[%s2790_s15 + $0x58] sm:$0xff]  ;;  %v3032_v5 = vld [vmem:[%s2798_s13 + $0xa8] sm:$0xff] }
  0x73   : > { %v800_v41 = vcombine.low %v2912_v27, %v2922_v30  ;;  %v750_v43 = vcombine.low %v2928_v32, %v2932_v35  ;;  %v1081_v24 = vadd.f32 %v799_v23, %v2874_v51  ;;  %v2970_v26 = vrot.slane %v719_v25, %v2821_v18  ;;  %v2992_v51 = vld [vmem:[%s2798_s13 + $0x58] sm:$0xff] }
  0x74   : > { %v662_v28 = vcombine.low %v606_v4, %v638_v13  ;;  %v663_v29 = vcombine.high %v606_v4, %v638_v13  ;;  %v664_v34 = vcombine.low %v613_v10, %v645_v15  ;;  %2315 = vmatmul.mubr.msk.f32.gmra.mxu1 %vm1121_vm0, %v2916_v17  ;;  %v665_v42 = vcombine.high %v613_v10, %v645_v15  ;;  %v3029_v4 = vld [vmem:[%s2798_s13 + $0x88] sm:$0xff]  ;;  %v3044_v9 = vld [vmem:[%s2798_s13 + $0x98] sm:$0xff] }
  0x75   : > { %2317 = vmatprep.mubr.msk.f32.mxu1 %vm1121_vm0, %v2925_v31  ;;  %v2984_v52 = vrot.slane %v614_v39, %v2862_v40  ;;  %v2987_v53 = vrot.slane %v646_v19, %v2862_v40  ;;  %v1083_v59 = vadd.f32 %v800_v41, %v2889_v1  ;;  %v801_v61 = vcombine.high %v2912_v27, %v2922_v30  ;;  %v3047_v10 = vld [vmem:[%s2798_s13 + $0xb8] sm:$0xff] }
  0x76   : > { %v1078_v37 = vadd.f32 %v662_v28, %v2813_v14  ;;  %v1080_v38 = vadd.f32 %v663_v29, %v472_v45  ;;  %v2949_v14 = vrot.slane %v703_v36, %v2821_v18  ;;  %v2962_v45 = vld [vmem:[%s2798_s13 + $0x8] sm:$0xff]  ;;  %v1082_v50 = vadd.f32 %v664_v34, %v2878_v55  ;;  %v3091_v34 = vld [vmem:[%s2798_s13 + $0xf8] sm:$0xff] }
  0x77   : > { %v806_v58 = vcombine.low %v2962_v45, %v2965_v46  ;;  %v1084_v60 = vadd.f32 %v665_v42, %v476_v8  ;;  %v3013_v62 = vrot.slane %v750_v43, %v2862_v40  ;;  %v822_v1 = vcombine.low %v2973_v47, %v2976_v48  ;;  %v3076_v28 = vld [vmem:[%s2798_s13 + $0xe8] sm:$0xff]  ;;  %v485_v19 = vld [vmem:[%s2790_s15 + $0x78] sm:$0xff] }
  0x78   : > { %2249 = vmatprep.mubr.msk.f32.mxu0 %vm1121_vm0, %v1078_v37  ;;  %2318 = vmatmul.mubr.msk.f32.gmra.mxu1 %vm1121_vm0, %v2946_v22  ;;  %v782_v55 = vcombine.low %v2949_v14, %v2970_v26  ;;  %v838_v2 = vcombine.low %v2979_v49, %v2995_v54  ;;  %v854_v3 = vcombine.low %v2992_v51, %v2998_v56 }
  0x79   : > { %2250 = vmatmul.mubr.msk.f32.vlgmr.msra.gmra.mxu0 %vm1121_vm0, %v1079_v33  ;;  %2320 = vmatprep.mubr.msk.f32.mxu1 %vm1121_vm0, %v2959_v44  ;;  %v666_v6 = vcombine.low %v2984_v52, %v2987_v53  ;;  %v615_v7 = vcombine.high %v2897_v11, %v2906_v16  ;;  %v647_v8 = vcombine.high %v2909_v20, %v2919_v21  ;;  %v3064_v20 = vld [vmem:[%s2790_s15 + $0x70] sm:$0xff]  ;;  %v3073_v21 = vld [vmem:[%s2798_s13 + $0xc8] sm:$0xff]  ;;  %v3088_v33 = vld [vmem:[%s2798_s13 + $0xd8] sm:$0xff] }
  0x7a   : > { %2252 = vmatprep.mubr.msk.f32.mxu0 %vm1121_vm0, %v1080_v38  ;;  %v3020_v0 = vrot.slane %v782_v55, %v2862_v40  ;;  %v751_v13 = vcombine.high %v2928_v32, %v2932_v35  ;;  %v3057_v15 = vrot.slane %v806_v58, %v2821_v18  ;;  %v3060_v11 = vrot.slane %v822_v1, %v2821_v18  ;;  %v488_v1 = vld [vmem:[%s2790_s15 + $0x90] sm:$0xff] }
  0x7b   : > { %v1085_v16 = vadd.f32 %v801_v61, %v2916_v17  ;;  %v3067_v23 = vrot.slane %v838_v2, %v2821_v18  ;;  %v3070_v27 = vrot.slane %v854_v3, %v2821_v18  ;;  %v942_v29 = vcombine.low %v3029_v4, %v3032_v5 }
  0x7c   : > { %2321 = vmatmul.mubr.msk.f32.gmra.mxu1 %vm1121_vm0, %v3005_v57  ;;  %v802_v17 = vcombine.low %v3013_v62, %v3020_v0  ;;  %v667_v30 = vcombine.high %v2984_v52, %v2987_v53  ;;  %v783_v32 = vcombine.high %v2949_v14, %v2970_v26  ;;  %v958_v35 = vcombine.low %v3044_v9, %v3047_v10 }
  0x7d   : > { %2253 = vmatmul.mubr.msk.f32.gmra.mxu0 %vm1121_vm0, %v1081_v24  ;;  %2323 = vmatprep.mubr.msk.f32.mxu1 %vm1121_vm0, %v3016_v63  ;;  %v1086_v36 = vadd.f32 %v666_v6, %v2925_v31  ;;  %v629_v37 = vrot.slane %v615_v7, %v2862_v40  ;;  %v661_v38 = vrot.slane %v647_v8, %v2862_v40  ;;  %v486_v31 = vld [vmem:[%s2790_s15 + $0x80] sm:$0xff]  ;;  %v489_v8 = vld [vmem:[%s2790_s15 + $0x98] sm:$0xff] }
  0x7e   : > { %2255 = vmatprep.mubr.msk.f32.mxu0 %vm1121_vm0, %v1082_v50  ;;  %v765_v39 = vrot.slane %v751_v13, %v2862_v40  ;;  %v870_v14 = vcombine.low %v3057_v15, %v3060_v11  ;;  %v974_v25 = vcombine.low %v3073_v21, %v3076_v28  ;;  %v902_v41 = vcombine.low %v3067_v23, %v3070_v27 }
  0x7f   : > { %v3113_v42 = vrot.slane %v942_v29, %v2821_v18  ;;  %v3116_v43 = vrot.slane %v958_v35, %v2821_v18  ;;  %v990_v24 = vcombine.low %v3088_v33, %v3091_v34  ;;  %v1087_v26 = vadd.f32 %v802_v17, %v2946_v22  ;;  %v487_v22 = vld [vmem:[%s2790_s15 + $0x88] sm:$0xff] }
  0x80   : > { %2324 = vmatmul.mubr.msk.f32.gmra.mxu1 %vm1121_vm0, %v3052_v12  ;;  %v803_v50 = vcombine.high %v3013_v62, %v3020_v0  ;;  %v797_v52 = vrot.slane %v783_v32, %v2862_v40  ;;  %v3126_v53 = vrot.slane %v974_v25, %v2821_v18  ;;  %v1088_v55 = vadd.f32 %v667_v30, %v2959_v44  ;;  %v490_v30 = vld [vmem:[%s2790_s15 + $0xa0] sm:$0xff] }
  0x81   : > { %2256 = vmatmul.mubr.msk.f32.gmra.mxu0 %vm1121_vm0, %v1083_v59  ;;  %2326 = vmatprep.mubr.msk.f32.mxu1 %vm1121_vm0, %v3064_v20  ;;  %v668_v58 = vcombine.low %v629_v37, %v661_v38  ;;  %v998_v59 = vrot.slane %v990_v24, %v2821_v18  ;;  %v910_v61 = vrot.slane %v902_v41, %v2862_v40 }
  0x82   : > { %2258 = vmatprep.mubr.msk.f32.mxu0 %vm1121_vm0, %v1084_v60  ;;  %v878_v60 = vrot.slane %v870_v14, %v2862_v40  ;;  %v1006_v62 = vcombine.low %v3113_v42, %v3116_v43  ;;  %v1089_v44 = vadd.f32 %v803_v50, %v3005_v57  ;;  %v804_v2 = vcombine.low %v765_v39, %v797_v52  ;;  %v495_v50 = vld [vmem:[%s2790_s15 + $0xc8] sm:$0xff] }
  0x83   : > { %v1038_v0 = vcombine.low %v3126_v53, %v998_v59  ;;  %v669_v3 = vcombine.high %v629_v37, %v661_v38  ;;  %v805_v6 = vcombine.high %v765_v39, %v797_v52  ;;  %v1090_v7 = vadd.f32 %v668_v58, %v3016_v63 }
  0x84   : > { %2327 = vmatmul.mubr.msk.f32.gmra.mxu1 %vm1121_vm0, %v485_v19  ;;  %v871_v13 = vcombine.high %v3057_v15, %v3060_v11  ;;  %v934_v29 = vcombine.low %v878_v60, %v910_v61  ;;  %v1014_v57 = vrot.slane %v1006_v62, %v2862_v40  ;;  %v807_v63 = vcombine.high %v2962_v45, %v2965_v46  ;;  %v497_v62 = vld [vmem:[%s2790_s15 + $0xd8] sm:$0xff] }
  0x85   : > { %2259 = vmatmul.mubr.msk.f32.gmra.mxu0 %vm1121_vm0, %v1085_v16  ;;  %2329 = vmatprep.mubr.msk.f32.mxu1 %vm1121_vm0, %v486_v31  ;;  %v903_v16 = vcombine.high %v3067_v23, %v3070_v27  ;;  %v1046_v17 = vrot.slane %v1038_v0, %v2862_v40  ;;  %v1091_v32 = vadd.f32 %v804_v2, %v3052_v12  ;;  %v491_v27 = vld [vmem:[%s2790_s15 + $0xa8] sm:$0xff] }
  0x86   : > { %2261 = vmatprep.mubr.msk.f32.mxu0 %vm1121_vm0, %v1086_v36  ;;  %v1092_v35 = vadd.f32 %v669_v3, %v3064_v20  ;;  %v1093_v15 = vadd.f32 %v805_v6, %v485_v19  ;;  %v823_v11 = vcombine.high %v2973_v47, %v2976_v48  ;;  %v839_v23 = vcombine.high %v2979_v49, %v2995_v54  ;;  %v492_v48 = vld [vmem:[%s2790_s15 + $0xb0] sm:$0xff] }
  0x87   : > { %v855_v45 = vcombine.high %v2992_v51, %v2998_v56  ;;  %v935_v46 = vcombine.high %v878_v60, %v910_v61  ;;  %v885_v12 = vrot.slane %v871_v13, %v2862_v40  ;;  %v917_v20 = vrot.slane %v903_v16, %v2862_v40  ;;  %v499_v16 = vld [vmem:[%s2790_s15 + $0xe8] sm:$0xff] }
  0x88   : > { %2330 = vmatmul.mubr.msk.f32.gmra.mxu1 %vm1121_vm0, %v487_v22  ;;  %v1007_v36 = vcombine.high %v3113_v42, %v3116_v43  ;;  %v1094_v37 = vadd.f32 %v934_v29, %v486_v31  ;;  %v1070_v38 = vcombine.low %v1014_v57, %v1046_v17  ;;  %v1039_v47 = vcombine.high %v3126_v53, %v998_v59  ;;  %v496_v53 = vld [vmem:[%s2790_s15 + $0xd0] sm:$0xff] }
  0x89   : > { %2262 = vmatmul.mubr.msk.f32.gmra.mxu0 %vm1121_vm0, %v1087_v26  ;;  %2332 = vmatprep.mubr.msk.f32.mxu1 %vm1121_vm0, %v488_v1  ;;  %v3176_v49 = vrot.slane %v807_v63, %v2821_v18  ;;  %v943_v51 = vcombine.high %v3029_v4, %v3032_v5  ;;  %v959_v54 = vcombine.high %v3044_v9, %v3047_v10  ;;  %v493_v9 = vld [vmem:[%s2790_s15 + $0xb8] sm:$0xff] }
  0x8a   : > { %2264 = vmatprep.mubr.msk.f32.mxu0 %vm1121_vm0, %v1088_v55  ;;  %v975_v56 = vcombine.high %v3073_v21, %v3076_v28  ;;  %v991_v39 = vcombine.high %v3088_v33, %v3091_v34  ;;  %v837_v19 = vrot.slane %v823_v11, %v2821_v18  ;;  %v853_v14 = vrot.slane %v839_v23, %v2821_v18  ;;  %v494_v34 = vld [vmem:[%s2790_s15 + $0xc0] sm:$0xff]  ;;  %v501_v23 = vld [vmem:[%s2790_s15 + $0xf8] sm:$0xff] }
  0x8b   : > { %v869_v4 = vrot.slane %v855_v45, %v2821_v18  ;;  %v1021_v5 = vrot.slane %v1007_v36, %v2862_v40  ;;  %v1095_v10 = vadd.f32 %v1070_v38, %v487_v22  ;;  %v1096_v21 = vadd.f32 %v935_v46, %v488_v1  ;;  %v498_v1 = vld [vmem:[%s2790_s15 + $0xe0] sm:$0xff] }
  0x8c   : > { %2333 = vmatmul.mubr.msk.f32.gmra.mxu1 %vm1121_vm0, %v489_v8  ;;  %v1071_v28 = vcombine.high %v1014_v57, %v1046_v17  ;;  %v1053_v33 = vrot.slane %v1039_v47, %v2862_v40  ;;  %v957_v25 = vrot.slane %v943_v51, %v2821_v18  ;;  %v973_v31 = vrot.slane %v959_v54, %v2821_v18  ;;  %v500_v57 = vld [vmem:[%s2790_s15 + $0xf0] sm:$0xff] }
  0x8d   : > { %2265 = vmatmul.mubr.msk.f32.gmra.mxu0 %vm1121_vm0, %v1089_v44  ;;  %2335 = vmatprep.mubr.msk.f32.mxu1 %vm1121_vm0, %v490_v30  ;;  %v989_v41 = vrot.slane %v975_v56, %v2821_v18  ;;  %v1005_v42 = vrot.slane %v991_v39, %v2821_v18  ;;  %v936_v43 = vcombine.low %v885_v12, %v917_v20  ;;  %v3249_v56 = vld [vmem:[%s3481_s5] ss:$0 sm:$0xff] }
  0x8e   : > { %2267 = vmatprep.mubr.msk.f32.mxu0 %vm1121_vm0, %v1090_v7  ;;  %v886_v24 = vcombine.low %v3176_v49, %v837_v19  ;;  %v918_v26 = vcombine.low %v853_v14, %v869_v4  ;;  %v937_v52 = vcombine.high %v885_v12, %v917_v20  ;;  %v1097_v55 = vadd.f32 %v1071_v28, %v489_v8 }
  0x8f   : > { %v1072_v58 = vcombine.low %v1021_v5, %v1053_v33  ;;  %v1022_v18 = vcombine.low %v957_v25, %v973_v31  ;;  %v1054_v59 = vcombine.low %v989_v41, %v1005_v42  ;;  %v1098_v22 = vadd.f32 %v936_v43, %v490_v30 }
  0x90   : > { %2336 = vmatmul.mubr.msk.f32.gmra.mxu1 %vm1121_vm0, %v491_v27  ;;  %v894_v60 = vrot.slane %v886_v24, %v2862_v40  ;;  %v926_v61 = vrot.slane %v918_v26, %v2862_v40  ;;  %v1073_v0 = vcombine.high %v1021_v5, %v1053_v33  ;;  %v1100_v2 = vadd.f32 %v937_v52, %v492_v48 }
  0x91   : > { %2268 = vmatmul.mubr.msk.f32.gmra.mxu0 %vm1121_vm0, %v1091_v32  ;;  %2338 = vmatprep.mubr.msk.f32.mxu1 %vm1121_vm0, %v492_v48  ;;  %v1099_v44 = vadd.f32 %v1072_v58, %v491_v27  ;;  %v1030_v3 = vrot.slane %v1022_v18, %v2862_v40  ;;  %v1062_v6 = vrot.slane %v1054_v59, %v2862_v40 }
  0x92   : > { %2270 = vmatprep.mubr.msk.f32.mxu0 %vm1121_vm0, %v1092_v35  ;;  %v938_v7 = vcombine.low %v894_v60, %v926_v61  ;;  %v887_v8 = vcombine.high %v3176_v49, %v837_v19  ;;  %v919_v13 = vcombine.high %v853_v14, %v869_v4  ;;  %v1101_v29 = vadd.f32 %v1073_v0, %v493_v9 }
  0x93   : > { %v1074_v17 = vcombine.low %v1030_v3, %v1062_v6  ;;  %v939_v30 = vcombine.high %v894_v60, %v926_v61  ;;  %v1023_v63 = vcombine.high %v957_v25, %v973_v31  ;;  %v1055_v32 = vcombine.high %v989_v41, %v1005_v42  ;;  %v3275_v41 = vld [vmem:[%s3479_s3] ss:$0 sm:$0xff] }
  0x94   : > { %2339 = vmatmul.mubr.msk.f32.gmra.mxu1 %vm1121_vm0, %v493_v9  ;;  %v1102_v35 = vadd.f32 %v938_v7, %v494_v34  ;;  %v933_v11 = vrot.slane %v919_v13, %v2862_v40  ;;  %v1075_v46 = vcombine.high %v1030_v3, %v1062_v6 }
  0x95   : > { %2271 = vmatmul.mubr.msk.f32.gmra.mxu0 %vm1121_vm0, %v1093_v15  ;;  %2341 = vmatprep.mubr.msk.f32.mxu1 %vm1121_vm0, %v494_v34  ;;  %v901_v15 = vrot.slane %v887_v8, %v2862_v40  ;;  %v1103_v45 = vadd.f32 %v1074_v17, %v495_v50  ;;  %v1037_v12 = vrot.slane %v1023_v63, %v2862_v40 }
  0x96   : > { %2273 = vmatprep.mubr.msk.f32.mxu0 %vm1121_vm0, %v1094_v37  ;;  %v1069_v20 = vrot.slane %v1055_v32, %v2862_v40  ;;  %v1104_v27 = vadd.f32 %v939_v30, %v496_v53  ;;  %v1105_v37 = vadd.f32 %v1075_v46, %v497_v62 }
  0x97   : > { %v940_v36 = vcombine.low %v901_v15, %v933_v11  ;;  %v941_v48 = vcombine.high %v901_v15, %v933_v11 }
  0x98   : > { %2342 = vmatmul.mubr.msk.f32.gmra.mxu1 %vm1121_vm0, %v495_v50  ;;  %v1076_v38 = vcombine.low %v1037_v12, %v1069_v20  ;;  %v1077_v40 = vcombine.high %v1037_v12, %v1069_v20 }
  0x99   : > { %2274 = vmatmul.mubr.msk.f32.gmra.mxu0 %vm1121_vm0, %v1095_v10  ;;  %2344 = vmatprep.mubr.msk.f32.mxu1 %vm1121_vm0, %v496_v53  ;;  %v1106_v47 = vadd.f32 %v940_v36, %v498_v1  ;;  %v1108_v51 = vadd.f32 %v941_v48, %v500_v57 }
  0x9a   : > { %2276 = vmatprep.mubr.msk.f32.mxu0 %vm1121_vm0, %v1096_v21  ;;  %v1107_v49 = vadd.f32 %v1076_v38, %v499_v16  ;;  %v1109_v54 = vadd.f32 %v1077_v40, %v501_v23 }
  0x9c   : > { %2345 = vmatmul.mubr.msk.f32.gmra.mxu1 %vm1121_vm0, %v497_v62 }
  0x9d   : > { %2277 = vmatmul.mubr.msk.f32.gmra.mxu0 %vm1121_vm0, %v1097_v55  ;;  %2347 = vmatprep.mubr.msk.f32.mxu1 %vm1121_vm0, %v498_v1 }
  0x9e   : > { %2279 = vmatprep.mubr.msk.f32.mxu0 %vm1121_vm0, %v1098_v22 }
  0xa0   : > { %2348 = vmatmul.mubr.msk.f32.gmra.mxu1 %vm1121_vm0, %v499_v16 }
  0xa1   : > { %2280 = vmatmul.mubr.msk.f32.gmra.mxu0 %vm1121_vm0, %v1099_v44  ;;  %2350 = vmatprep.mubr.msk.f32.mxu1 %vm1121_vm0, %v500_v57 }
  0xa2   : > { %2282 = vmatprep.mubr.msk.f32.mxu0 %vm1121_vm0, %v1100_v2 }
  0xa4   : > { %2351 = vmatmul.mubr.msk.f32.gmra.mxu1 %vm1121_vm0, %v501_v23 }
  0xa5   : > { %2283 = vmatmul.mubr.msk.f32.gmra.mxu0 %vm1121_vm0, %v1101_v29 }
  0xa6   : > { %2285 = vmatprep.mubr.msk.f32.mxu0 %vm1121_vm0, %v1102_v35 }
  0xa9   : > { %2286 = vmatmul.mubr.msk.f32.gmra.mxu0 %vm1121_vm0, %v1103_v45 }
  0xaa   : > { %2288 = vmatprep.mubr.msk.f32.mxu0 %vm1121_vm0, %v1104_v27 }
  0xad   : > { %2289 = vmatmul.mubr.msk.f32.gmra.mxu0 %vm1121_vm0, %v1105_v37 }
  0xae   : > { %2291 = vmatprep.mubr.msk.f32.mxu0 %vm1121_vm0, %v1106_v47 }
  0xb1   : > { %2292 = vmatmul.mubr.msk.f32.gmra.mxu0 %vm1121_vm0, %v1107_v49 }
  0xb2   : > { %2294 = vmatprep.mubr.msk.f32.mxu0 %vm1121_vm0, %v1108_v51 }
  0xb5   : > { %2295 = vmatmul.mubr.msk.f32.gmra.mxu0 %vm1121_vm0, %v1109_v54 }
 0x128   : > { %v2307_v39 = vpop.f32.mrf.mxu1 }
 0x129   : > { %v1622_v19 = vadd.f32 %v2307_v39, %v3249_v56 }
 0x12a   : > { %v1616_v14 = vpop.f32.mrf.mxu1 }
 0x12b   : > { %1810 = vst.msk [vmem:[%s3254_s12 + $0x8] sm:$0xff] %vm1808_vm1, %v1622_v19  ;;  %v1617_v4 = vadd.f32 %v3249_v56, %v1616_v14 }
 0x12c   : > { %v2310_v5 = vpop.f32.mrf.mxu1 }
 0x12d   : > { %1809 = vst.msk [vmem:[%s3254_s12] sm:$0xff] %vm1808_vm1, %v1617_v4  ;;  %v1632_v9 = vadd.f32 %v2310_v5, %v3249_v56 }
 0x12e   : > { %v1626_v10 = vpop.f32.mrf.mxu1 }
 0x12f   : > { %1812 = vst.msk [vmem:[%s3254_s12 + $0x18] sm:$0xff] %vm1808_vm1, %v1632_v9  ;;  %v1627_v21 = vadd.f32 %v3249_v56, %v1626_v10 }
 0x130   : > { %v2313_v28 = vpop.f32.mrf.mxu1 }
 0x131   : > { %1811 = vst.msk [vmem:[%s3254_s12 + $0x10] sm:$0xff] %vm1808_vm1, %v1627_v21  ;;  %v1642_v33 = vadd.f32 %v2313_v28, %v3249_v56 }
 0x132   : > { %v1636_v34 = vpop.f32.mrf.mxu1 }
 0x133   : > { %1814 = vst.msk [vmem:[%s3254_s12 + $0x28] sm:$0xff] %vm1808_vm1, %v1642_v33  ;;  %v1637_v25 = vadd.f32 %v3249_v56, %v1636_v34 }
 0x134   : > { %v2316_v31 = vpop.f32.mrf.mxu1 }
 0x135   : > { %1813 = vst.msk [vmem:[%s3254_s12 + $0x20] sm:$0xff] %vm1808_vm1, %v1637_v25  ;;  %v1652_v42 = vadd.f32 %v2316_v31, %v3249_v56 }
 0x136   : > { %v1646_v43 = vpop.f32.mrf.mxu1 }
 0x137   : > { %1816 = vst.msk [vmem:[%s3254_s12 + $0x38] sm:$0xff] %vm1808_vm1, %v1652_v42  ;;  %v1647_v26 = vadd.f32 %v3249_v56, %v1646_v43 }
 0x138   : > { %v2319_v52 = vpop.f32.mrf.mxu1 }
 0x139   : > { %v2251_v24 = vpop.f32.mrf.mxu0  ;;  %1815 = vst.msk [vmem:[%s3254_s12 + $0x30] sm:$0xff] %vm1808_vm1, %v1647_v26  ;;  %v1662_v55 = vadd.f32 %v2319_v52, %v3249_v56 }
 0x13a   : > { %v1290_v50 = vadd.f32 %v2251_v24, %v3275_v41  ;;  %v1656_v18 = vpop.f32.mrf.mxu1 }
 0x13b   : > { %v1284_v53 = vpop.f32.mrf.mxu0  ;;  %1818 = vst.msk [vmem:[%s3254_s12 + $0x48] sm:$0xff] %vm1808_vm1, %v1662_v55  ;;  %v1657_v22 = vadd.f32 %v3249_v56, %v1656_v18 }
 0x13c   : > { %1777 = vst.msk [vmem:[%s3283_s11 + $0x8] sm:$0xff] %vm1775_vm2, %v1290_v50  ;;  %v1285_v58 = vadd.f32 %v3275_v41, %v1284_v53  ;;  %v2322_v61 = vpop.f32.mrf.mxu1 }
 0x13d   : > { %v2254_v59 = vpop.f32.mrf.mxu0  ;;  %1817 = vst.msk [vmem:[%s3254_s12 + $0x40] sm:$0xff] %vm1808_vm1, %v1657_v22  ;;  %v1672_v0 = vadd.f32 %v2322_v61, %v3249_v56 }
 0x13e   : > { %1776 = vst.msk [vmem:[%s3283_s11] sm:$0xff] %vm1775_vm2, %v1285_v58  ;;  %v1300_v60 = vadd.f32 %v2254_v59, %v3275_v41  ;;  %v1666_v44 = vpop.f32.mrf.mxu1 }
 0x13f   : > { %v1294_v62 = vpop.f32.mrf.mxu0  ;;  %1820 = vst.msk [vmem:[%s3254_s12 + $0x58] sm:$0xff] %vm1808_vm1, %v1672_v0  ;;  %v1667_v3 = vadd.f32 %v3249_v56, %v1666_v44 }
 0x140   : > { %1779 = vst.msk [vmem:[%s3283_s11 + $0x18] sm:$0xff] %vm1775_vm2, %v1300_v60  ;;  %v1295_v1 = vadd.f32 %v3275_v41, %v1294_v62  ;;  %v2325_v7 = vpop.f32.mrf.mxu1 }
 0x141   : > { %v2257_v2 = vpop.f32.mrf.mxu0  ;;  %1819 = vst.msk [vmem:[%s3254_s12 + $0x50] sm:$0xff] %vm1808_vm1, %v1667_v3  ;;  %v1682_v13 = vadd.f32 %v2325_v7, %v3249_v56 }
 0x142   : > { %1778 = vst.msk [vmem:[%s3283_s11 + $0x10] sm:$0xff] %vm1775_vm2, %v1295_v1  ;;  %v1310_v6 = vadd.f32 %v2257_v2, %v3275_v41  ;;  %v1676_v29 = vpop.f32.mrf.mxu1 }
 0x143   : > { %v1304_v8 = vpop.f32.mrf.mxu0  ;;  %1822 = vst.msk [vmem:[%s3254_s12 + $0x68] sm:$0xff] %vm1808_vm1, %v1682_v13  ;;  %v1677_v17 = vadd.f32 %v3249_v56, %v1676_v29 }
 0x144   : > { %1781 = vst.msk [vmem:[%s3283_s11 + $0x28] sm:$0xff] %vm1775_vm2, %v1310_v6  ;;  %v1305_v16 = vadd.f32 %v3275_v41, %v1304_v8  ;;  %v2328_v63 = vpop.f32.mrf.mxu1 }
 0x145   : > { %v2260_v57 = vpop.f32.mrf.mxu0  ;;  %1821 = vst.msk [vmem:[%s3254_s12 + $0x60] sm:$0xff] %vm1808_vm1, %v1677_v17  ;;  %v1692_v35 = vadd.f32 %v2328_v63, %v3249_v56 }
 0x146   : > { %1780 = vst.msk [vmem:[%s3283_s11 + $0x20] sm:$0xff] %vm1775_vm2, %v1305_v16  ;;  %v1320_v30 = vadd.f32 %v2260_v57, %v3275_v41  ;;  %v1686_v11 = vpop.f32.mrf.mxu1 }
 0x147   : > { %v1314_v32 = vpop.f32.mrf.mxu0  ;;  %1824 = vst.msk [vmem:[%s3254_s12 + $0x78] sm:$0xff] %vm1808_vm1, %v1692_v35  ;;  %v1687_v45 = vadd.f32 %v3249_v56, %v1686_v11 }
 0x148   : > { %1783 = vst.msk [vmem:[%s3283_s11 + $0x38] sm:$0xff] %vm1775_vm2, %v1320_v30  ;;  %v1315_v15 = vadd.f32 %v3275_v41, %v1314_v32  ;;  %v2331_v12 = vpop.f32.mrf.mxu1 }
 0x149   : > { %v2263_v23 = vpop.f32.mrf.mxu0  ;;  %1823 = vst.msk [vmem:[%s3254_s12 + $0x70] sm:$0xff] %vm1808_vm1, %v1687_v45  ;;  %v1702_v27 = vadd.f32 %v2331_v12, %v3249_v56 }
 0x14a   : > { %1782 = vst.msk [vmem:[%s3283_s11 + $0x30] sm:$0xff] %vm1775_vm2, %v1315_v15  ;;  %v1330_v46 = vadd.f32 %v2263_v23, %v3275_v41  ;;  %v1696_v37 = vpop.f32.mrf.mxu1 }
 0x14b   : > { %v1324_v20 = vpop.f32.mrf.mxu0  ;;  %1826 = vst.msk [vmem:[%s3254_s12 + $0x88] sm:$0xff] %vm1808_vm1, %v1702_v27  ;;  %v1697_v47 = vadd.f32 %v3249_v56, %v1696_v37 }
 0x14c   : > { %1785 = vst.msk [vmem:[%s3283_s11 + $0x48] sm:$0xff] %vm1775_vm2, %v1330_v46  ;;  %v1325_v36 = vadd.f32 %v3275_v41, %v1324_v20  ;;  %v2334_v49 = vpop.f32.mrf.mxu1 }
 0x14d   : > { %v2266_v38 = vpop.f32.mrf.mxu0  ;;  %1825 = vst.msk [vmem:[%s3254_s12 + $0x80] sm:$0xff] %vm1808_vm1, %v1697_v47  ;;  %v1712_v51 = vadd.f32 %v2334_v49, %v3249_v56 }
 0x14e   : > { %1784 = vst.msk [vmem:[%s3283_s11 + $0x40] sm:$0xff] %vm1775_vm2, %v1325_v36  ;;  %v1340_v48 = vadd.f32 %v2266_v38, %v3275_v41  ;;  %v1706_v39 = vpop.f32.mrf.mxu1 }
 0x14f   : > { %v1334_v40 = vpop.f32.mrf.mxu0  ;;  %1828 = vst.msk [vmem:[%s3254_s12 + $0x98] sm:$0xff] %vm1808_vm1, %v1712_v51  ;;  %v1707_v14 = vadd.f32 %v3249_v56, %v1706_v39 }
 0x150   : > { %1787 = vst.msk [vmem:[%s3283_s11 + $0x58] sm:$0xff] %vm1775_vm2, %v1340_v48  ;;  %v1335_v54 = vadd.f32 %v3275_v41, %v1334_v40  ;;  %v2337_v5 = vpop.f32.mrf.mxu1 }
 0x151   : > { %v2269_v19 = vpop.f32.mrf.mxu0  ;;  %1827 = vst.msk [vmem:[%s3254_s12 + $0x90] sm:$0xff] %vm1808_vm1, %v1707_v14  ;;  %v1722_v10 = vadd.f32 %v2337_v5, %v3249_v56 }
 0x152   : > { %1786 = vst.msk [vmem:[%s3283_s11 + $0x50] sm:$0xff] %vm1775_vm2, %v1335_v54  ;;  %v1350_v4 = vadd.f32 %v2269_v19, %v3275_v41  ;;  %v1716_v28 = vpop.f32.mrf.mxu1 }
 0x153   : > { %v1344_v9 = vpop.f32.mrf.mxu0  ;;  %1830 = vst.msk [vmem:[%s3254_s12 + $0xa8] sm:$0xff] %vm1808_vm1, %v1722_v10  ;;  %v1717_v34 = vadd.f32 %v3249_v56, %v1716_v28 }
 0x154   : > { %1789 = vst.msk [vmem:[%s3283_s11 + $0x68] sm:$0xff] %vm1775_vm2, %v1350_v4  ;;  %v1345_v21 = vadd.f32 %v3275_v41, %v1344_v9  ;;  %v2340_v31 = vpop.f32.mrf.mxu1 }
 0x155   : > { %v2272_v33 = vpop.f32.mrf.mxu0  ;;  %1829 = vst.msk [vmem:[%s3254_s12 + $0xa0] sm:$0xff] %vm1808_vm1, %v1717_v34  ;;  %v1732_v43 = vadd.f32 %v2340_v31, %v3249_v56 }
 0x156   : > { %1788 = vst.msk [vmem:[%s3283_s11 + $0x60] sm:$0xff] %vm1775_vm2, %v1345_v21  ;;  %v1360_v25 = vadd.f32 %v2272_v33, %v3275_v41  ;;  %v1726_v26 = vpop.f32.mrf.mxu1 }
 0x157   : > { %v1354_v42 = vpop.f32.mrf.mxu0  ;;  %1832 = vst.msk [vmem:[%s3254_s12 + $0xb8] sm:$0xff] %vm1808_vm1, %v1732_v43  ;;  %v1727_v52 = vadd.f32 %v3249_v56, %v1726_v26 }
 0x158   : > { %1791 = vst.msk [vmem:[%s3283_s11 + $0x78] sm:$0xff] %vm1775_vm2, %v1360_v25  ;;  %v1355_v24 = vadd.f32 %v3275_v41, %v1354_v42  ;;  %v2343_v55 = vpop.f32.mrf.mxu1 }
 0x159   : > { %v2275_v50 = vpop.f32.mrf.mxu0  ;;  %1831 = vst.msk [vmem:[%s3254_s12 + $0xb0] sm:$0xff] %vm1808_vm1, %v1727_v52  ;;  %v1742_v18 = vadd.f32 %v2343_v55, %v3249_v56 }
 0x15a   : > { %1790 = vst.msk [vmem:[%s3283_s11 + $0x70] sm:$0xff] %vm1775_vm2, %v1355_v24  ;;  %v1370_v53 = vadd.f32 %v2275_v50, %v3275_v41  ;;  %v1736_v22 = vpop.f32.mrf.mxu1 }
 0x15b   : > { %v1364_v58 = vpop.f32.mrf.mxu0  ;;  %1834 = vst.msk [vmem:[%s3254_s12 + $0xc8] sm:$0xff] %vm1808_vm1, %v1742_v18  ;;  %v1737_v61 = vadd.f32 %v3249_v56, %v1736_v22 }
 0x15c   : > { %1793 = vst.msk [vmem:[%s3283_s11 + $0x88] sm:$0xff] %vm1775_vm2, %v1370_v53  ;;  %v1365_v59 = vadd.f32 %v3275_v41, %v1364_v58  ;;  %v2346_v0 = vpop.f32.mrf.mxu1 }
 0x15d   : > { %v2278_v60 = vpop.f32.mrf.mxu0  ;;  %1833 = vst.msk [vmem:[%s3254_s12 + $0xc0] sm:$0xff] %vm1808_vm1, %v1737_v61  ;;  %v1752_v44 = vadd.f32 %v2346_v0, %v3249_v56 }
 0x15e   : > { %1792 = vst.msk [vmem:[%s3283_s11 + $0x80] sm:$0xff] %vm1775_vm2, %v1365_v59  ;;  %v1380_v62 = vadd.f32 %v2278_v60, %v3275_v41  ;;  %v1746_v3 = vpop.f32.mrf.mxu1 }
 0x15f   : > { %v1374_v1 = vpop.f32.mrf.mxu0  ;;  %1836 = vst.msk [vmem:[%s3254_s12 + $0xd8] sm:$0xff] %vm1808_vm1, %v1752_v44  ;;  %v1747_v7 = vadd.f32 %v3249_v56, %v1746_v3 }
 0x160   : > { %1795 = vst.msk [vmem:[%s3283_s11 + $0x98] sm:$0xff] %vm1775_vm2, %v1380_v62  ;;  %v1375_v2 = vadd.f32 %v3275_v41, %v1374_v1  ;;  %v2349_v13 = vpop.f32.mrf.mxu1 }
 0x161   : > { %v2281_v6 = vpop.f32.mrf.mxu0  ;;  %1835 = vst.msk [vmem:[%s3254_s12 + $0xd0] sm:$0xff] %vm1808_vm1, %v1747_v7  ;;  %v1762_v29 = vadd.f32 %v2349_v13, %v3249_v56 }
 0x162   : > { %1794 = vst.msk [vmem:[%s3283_s11 + $0x90] sm:$0xff] %vm1775_vm2, %v1375_v2  ;;  %v1390_v8 = vadd.f32 %v2281_v6, %v3275_v41  ;;  %v1756_v17 = vpop.f32.mrf.mxu1 }
 0x163   : > { %v1384_v16 = vpop.f32.mrf.mxu0  ;;  %1838 = vst.msk [vmem:[%s3254_s12 + $0xe8] sm:$0xff] %vm1808_vm1, %v1762_v29  ;;  %v1757_v63 = vadd.f32 %v3249_v56, %v1756_v17 }
 0x164   : > { %1797 = vst.msk [vmem:[%s3283_s11 + $0xa8] sm:$0xff] %vm1775_vm2, %v1390_v8  ;;  %v1385_v57 = vadd.f32 %v3275_v41, %v1384_v16  ;;  %v2352_v35 = vpop.f32.mrf.mxu1 }
 0x165   : > { %v2284_v30 = vpop.f32.mrf.mxu0  ;;  %1837 = vst.msk [vmem:[%s3254_s12 + $0xe0] sm:$0xff] %vm1808_vm1, %v1757_v63  ;;  %v1772_v11 = vadd.f32 %v2352_v35, %v3249_v56 }
 0x166   : > { %1796 = vst.msk [vmem:[%s3283_s11 + $0xa0] sm:$0xff] %vm1775_vm2, %v1385_v57  ;;  %v1400_v32 = vadd.f32 %v2284_v30, %v3275_v41  ;;  %v1766_v45 = vpop.f32.mrf.mxu1 }
 0x167   : > { %v1394_v15 = vpop.f32.mrf.mxu0  ;;  %1840 = vst.msk [vmem:[%s3254_s12 + $0xf8] sm:$0xff] %vm1808_vm1, %v1772_v11  ;;  %v1767_v12 = vadd.f32 %v3249_v56, %v1766_v45 }
 0x168   : > { %1799 = vst.msk [vmem:[%s3283_s11 + $0xb8] sm:$0xff] %vm1775_vm2, %v1400_v32  ;;  %v1395_v23 = vadd.f32 %v3275_v41, %v1394_v15 }
 0x169   : > { %v2287_v46 = vpop.f32.mrf.mxu0  ;;  %1839 = vst.msk [vmem:[%s3254_s12 + $0xf0] sm:$0xff] %vm1808_vm1, %v1767_v12 }
 0x16a   : > { %1798 = vst.msk [vmem:[%s3283_s11 + $0xb0] sm:$0xff] %vm1775_vm2, %v1395_v23  ;;  %v1410_v20 = vadd.f32 %v2287_v46, %v3275_v41 }
 0x16b   : > { %v1404_v27 = vpop.f32.mrf.mxu0 }
 0x16c   : > { %1801 = vst.msk [vmem:[%s3283_s11 + $0xc8] sm:$0xff] %vm1775_vm2, %v1410_v20  ;;  %v1405_v36 = vadd.f32 %v3275_v41, %v1404_v27 }
 0x16d   : > { %v2290_v37 = vpop.f32.mrf.mxu0 }
 0x16e   : > { %1800 = vst.msk [vmem:[%s3283_s11 + $0xc0] sm:$0xff] %vm1775_vm2, %v1405_v36  ;;  %v1420_v38 = vadd.f32 %v2290_v37, %v3275_v41 }
 0x16f   : > { %v1414_v56 = vpop.f32.mrf.mxu0 }
 0x170   : > { %1803 = vst.msk [vmem:[%s3283_s11 + $0xd8] sm:$0xff] %vm1775_vm2, %v1420_v38  ;;  %v1415_v47 = vadd.f32 %v3275_v41, %v1414_v56 }
 0x171   : > { %v2293_v48 = vpop.f32.mrf.mxu0 }
 0x172   : > { %1802 = vst.msk [vmem:[%s3283_s11 + $0xd0] sm:$0xff] %vm1775_vm2, %v1415_v47  ;;  %v1430_v49 = vadd.f32 %v2293_v48, %v3275_v41 }
 0x173   : > { %v1424_v40 = vpop.f32.mrf.mxu0 }
 0x174   : > { %1805 = vst.msk [vmem:[%s3283_s11 + $0xe8] sm:$0xff] %vm1775_vm2, %v1430_v49  ;;  %v1425_v51 = vadd.f32 %v3275_v41, %v1424_v40 }
 0x175   : > { %v2296_v54 = vpop.f32.mrf.mxu0 }
 0x176   : > { %1804 = vst.msk [vmem:[%s3283_s11 + $0xe0] sm:$0xff] %vm1775_vm2, %v1425_v51  ;;  %v1440_v39 = vadd.f32 %v2296_v54, %v3275_v41 }
 0x177   : > { %v1434_v19 = vpop.f32.mrf.mxu0 }
 0x178   : > { %1807 = vst.msk [vmem:[%s3283_s11 + $0xf8] sm:$0xff] %vm1775_vm2, %v1440_v39  ;;  %v1435_v14 = vadd.f32 %v3275_v41, %v1434_v19 }
 0x17a   : > { %1806 = vst.msk [vmem:[%s3283_s11 + $0xf0] sm:$0xff] %vm1775_vm2, %v1435_v14 }
 0x17b PF: > { %s25_s29 = sadd.s32 1, %s2608_s29   ;;  %s3503_s20 = smov %s3510_s24 }
 0x17c   : > { %p22_p4 = scmp.ge.s32.totalorder %s25_s29, 4   ;;  %s3504_s24 = smov %s2592_s25 }
 0x17d   : > { %s3505_s25 = smov %s2596_s26  ;;  %s3506_s26 = smov %s2751_s19 }
 0x17e   : > { %s3507_s27 = smov %s2604_s28  ;;  %s3508_s28 = smov %s3503_s20 }
 0x17f   :  { %24 = sbr.rel (!%p22_p4) target bundleno = 11 (0xb), region = 117 }
 0x184   :  { %1918 = vsyncpa [#allocation3], 1 }
 0x185   :  { %1920 = vsyncpa [#allocation3 + $0x1], 1 }
 0x186   :  { %1921 = vsyncpa [#allocation5], 1 }
 0x187   :  { %1923 = vsyncpa [#allocation5 + $0x1], 1 }
 0x188   :  { %1924 = vsyncpa [#allocation8], 1 }

</bundles_post_ra>
